<compile_context>
chip_gen: v7x
topology: tpu7x:2x2x1
jax: 0.10.0
libtpu: 0.0.40
codegen_flags: <defaults>
</compile_context>

<pallas_src>
import functools

import jax
import jax.numpy as jnp
from jax import lax
from jax.experimental import pallas as pl
from jax.experimental.pallas import tpu as pltpu

_LANES = 128
_SUBLANES = 8
_MIN_PALLAS_BYTES = 512 * 1024            # below this, fused XLA wins
_VMEM_INPUT_BUDGET = 24 * 1024 * 1024     # in-flight input bytes (2 bufs x 2 inputs)


def _round_up(x, m):
    return ((x + m - 1) // m) * m


def _pow_expr(x, p):
    if p == 2:
        return x * x
    if isinstance(p, int):
        return lax.integer_pow(x, p)
    return x ** p


def _dice_kernel(p_ref, t_ref, num_ref, den_ref, *, p_pow, rows_total,
                 block_rows, grid_r, any_ragged):
    """Accumulate per-(split, sample) partial num/den sums.

    p_ref/t_ref : (1, block_rows, 128) input tiles.
    num_ref/den_ref : (1, 1, 8, 128) f32 output slabs; same block index across
        the row ('arbitrary') axis, so they stay VMEM-resident and act as the
        accumulators (init at r == 0, written back once per (split, sample)).
    """
    r = pl.program_id(2)

    @pl.when(r == 0)
    def _():
        num_ref[...] = jnp.zeros_like(num_ref)
        den_ref[...] = jnp.zeros_like(den_ref)

    pred = p_ref[0].astype(jnp.float32)          # (block_rows, 128)
    targ = t_ref[0].astype(jnp.float32)
    groups = block_rows // _SUBLANES

    def _accumulate(pred, targ):
        prod = pred * targ
        den_el = _pow_expr(pred, p_pow) + _pow_expr(targ, p_pow)
        if groups > 1:
            # Fold sublane groups in registers: vreg-wise VALU adds, no XLU.
            prod = prod.reshape(groups, _SUBLANES, _LANES).sum(axis=0)
            den_el = den_el.reshape(groups, _SUBLANES, _LANES).sum(axis=0)
        num_ref[0, 0] += prod
        den_ref[0, 0] += den_el

    if any_ragged:
        s = pl.program_id(0)
        # Logical (unclamped) starting row of this block.
        block_start = (s * grid_r + r) * block_rows
        is_full = (block_start + block_rows) <= rows_total

        @pl.when(is_full)
        def _():                                  # steady state: no mask
            _accumulate(pred, targ)

        @pl.when(jnp.logical_not(is_full))
        def _():                                  # ragged / fully-OOB block only
            row_ids = lax.broadcasted_iota(jnp.int32, (block_rows, _LANES), 0)
            valid = (block_start + row_ids) < rows_total
            zero = jnp.zeros_like(pred)
            _accumulate(jnp.where(valid, pred, zero),
                        jnp.where(valid, targ, zero))
    else:
        _accumulate(pred, targ)


def _dice_terms_jnp(pr, tg, p):
    pr32 = pr.astype(jnp.float32)
    tg32 = tg.astype(jnp.float32)
    num = jnp.sum(pr32 * tg32, axis=1)
    den = jnp.sum(_pow_expr(pr32, p) + _pow_expr(tg32, p), axis=1)
    return num, den


def binary_dice_loss(predict, target, *, smooth=1.0, p=2, reduction="mean",
                     max_block_rows=4096, force_pallas=False):
    assert predict.shape[0] == target.shape[0], (
        "predict & target batch size don't match")
    B = predict.shape[0]
    pr = predict.reshape(B, -1)
    tg = target.reshape(B, -1)
    N = pr.shape[1]

    rows = N // _LANES                 # full 128-wide rows
    tail = N - rows * _LANES           # <128 trailing elements per sample

    body_bytes = B * rows * _LANES * max(pr.dtype.itemsize, tg.dtype.itemsize)
    use_pallas = rows >= _SUBLANES and (force_pallas or
                                        body_bytes >= _MIN_PALLAS_BYTES)

    if not use_pallas:
        # Small-problem fallback: fused XLA reduction (no kernel overhead).
        num, den = _dice_terms_jnp(pr, tg, p)
    else:
        body = rows * _LANES
        if tail:
            pr_body, tg_body = pr[:, :body], tg[:, :body]
        else:
            pr_body, tg_body = pr, tg
        pr3 = pr_body.reshape(B, rows, _LANES)   # free when N % 128 == 0
        tg3 = tg_body.reshape(B, rows, _LANES)

        # Row-split across 2 cores when batch alone can't keep a v7x busy.
        splits = 2 if (B == 1 and rows >= 2 * _SUBLANES) else 1
        rows_per_split = pl.cdiv(rows, splits)

        itemsize_sum = pr3.dtype.itemsize + tg3.dtype.itemsize
        cap_rows = max(_SUBLANES,
                       (_VMEM_INPUT_BUDGET // (2 * _LANES * itemsize_sum))
                       // _SUBLANES * _SUBLANES)
        block_rows = min(int(max_block_rows), cap_rows,
                         _round_up(rows_per_split, _SUBLANES))
        block_rows = max(_SUBLANES, _round_up(block_rows, _SUBLANES))

        num_row_blocks = pl.cdiv(rows, block_rows)
        grid_r = pl.cdiv(num_row_blocks, splits)
        any_ragged = (splits * grid_r * block_rows) != rows
        need_clamp = splits * grid_r > num_row_blocks

        def in_map(s, b, r):
            blk = s * grid_r + r
            if need_clamp:
                blk = jnp.minimum(blk, num_row_blocks - 1)
            return (b, blk, 0)

        def out_map(s, b, r):
            return (s, b, 0, 0)

        kernel = functools.partial(
            _dice_kernel, p_pow=p, rows_total=rows, block_rows=block_rows,
            grid_r=grid_r, any_ragged=any_ragged)

        in_flight = 2 * block_rows * _LANES * itemsize_sum   # 2 bufs x both inputs
        vmem_limit = int(min(48 * 1024 * 1024,
                             max(in_flight + (4 << 20), 16 * 1024 * 1024)))

        num_slab, den_slab = pl.pallas_call(
            kernel,
            out_shape=(
                jax.ShapeDtypeStruct((splits, B, _SUBLANES, _LANES), jnp.float32),
                jax.ShapeDtypeStruct((splits, B, _SUBLANES, _LANES), jnp.float32),
            ),
            grid_spec=pltpu.PrefetchScalarGridSpec(
                num_scalar_prefetch=0,
                grid=(splits, B, grid_r),
                in_specs=[
                    pl.BlockSpec((1, block_rows, _LANES), in_map),
                    pl.BlockSpec((1, block_rows, _LANES), in_map),
                ],
                out_specs=(
                    pl.BlockSpec((1, 1, _SUBLANES, _LANES), out_map),
                    pl.BlockSpec((1, 1, _SUBLANES, _LANES), out_map),
                ),
            ),
            compiler_params=pltpu.CompilerParams(
                dimension_semantics=("parallel", "parallel", "arbitrary"),
                vmem_limit_bytes=vmem_limit),
        )(pr3, tg3)

        num = jnp.sum(num_slab, axis=(0, 2, 3))   # (B,)
        den = jnp.sum(den_slab, axis=(0, 2, 3))

        if tail:
            # Tiny (<128 elems/sample) tail handled outside the kernel.
            pr_t = pr[:, body:].astype(jnp.float32)
            tg_t = tg[:, body:].astype(jnp.float32)
            num = num + jnp.sum(pr_t * tg_t, axis=1)
            den = den + jnp.sum(_pow_expr(pr_t, p) + _pow_expr(tg_t, p), axis=1)

    num = num + smooth
    den = den + smooth
    loss = 1.0 - num / den

    if reduction == "mean":
        return jnp.mean(loss)
    elif reduction == "sum":
        return jnp.sum(loss)
    elif reduction == "none":
        return loss
    else:
        raise Exception("Unexpected reduction {}".format(reduction))


def _reference(predict, target, smooth=1.0, p=2, reduction="mean"):
    B = predict.shape[0]
    pr = predict.reshape(B, -1).astype(jnp.float32)
    tg = target.reshape(B, -1).astype(jnp.float32)
    num = jnp.sum(pr * tg, axis=1) + smooth
    den = jnp.sum(pr ** p + tg ** p, axis=1) + smooth
    loss = 1.0 - num / den
    if reduction == "mean":
        return jnp.mean(loss)
    if reduction == "sum":
        return jnp.sum(loss)
    return loss


if __name__ == "__main__":
    key = jax.random.PRNGKey(0)
    keys = jax.random.split(key, 6)

    # Test 1: main case B=2, C=4, H=16, W=16 (N=1024, aligned, single block).
    B, C, H, W = 2, 4, 16, 16
    predict = jax.nn.sigmoid(jax.random.normal(keys[0], (B, C, H, W), jnp.float32))
    target = (jax.random.uniform(keys[1], (B, C, H, W)) > 0.5).astype(jnp.float32)
    out = binary_dice_loss(predict, target, smooth=1.0, p=2, reduction="mean",
                           force_pallas=True)
    out = jax.block_until_ready(out)
    ref = _reference(predict, target)
    assert jnp.allclose(out, ref, atol=1e-5, rtol=1e-5), (out, ref)

    # Same inputs through the small-problem (plain-jnp) fallback path.
    out_fb = jax.block_until_ready(binary_dice_loss(predict, target))
    assert jnp.allclose(out_fb, ref, atol=1e-5, rtol=1e-5), (out_fb, ref)

    # Test 2: ragged row-blocks (rows=10, block_rows=8) -> gated mask path.
    C2, H2, W2 = 4, 16, 20
    p2 = jax.nn.sigmoid(jax.random.normal(keys[2], (B, C2, H2, W2), jnp.float32))
    t2 = (jax.random.uniform(keys[3], (B, C2, H2, W2)) > 0.5).astype(jnp.float32)
    out2 = binary_dice_loss(p2, t2, reduction="none", max_block_rows=8,
                            force_pallas=True)
    out2 = jax.block_until_ready(out2)
    ref2 = _reference(p2, t2, reduction="none")
    assert jnp.allclose(out2, ref2, atol=1e-5, rtol=1e-5), (out2, ref2)

    # Test 3: B=1 -> two-way row split (keeps both v7x cores busy), unaligned
    # N (wrapper tail path), and a clamped fully-OOB block (max_block_rows=8).
    B3, C3, H3, W3 = 1, 5, 23, 19          # N = 2185 = 17*128 + 9
    p3 = jax.nn.sigmoid(jax.random.normal(keys[4], (B3, C3, H3, W3), jnp.float32))
    t3 = (jax.random.uniform(keys[5], (B3, C3, H3, W3)) > 0.5).astype(jnp.float32)
    out3 = binary_dice_loss(p3, t3, reduction="sum", max_block_rows=8,
                            force_pallas=True)
    out3 = jax.block_until_ready(out3)
    ref3 = _reference(p3, t3, reduction="sum")
    assert jnp.allclose(out3, ref3, atol=1e-5, rtol=1e-5), (out3, ref3)

    # Test 4: bf16 inputs (kernel keeps input dtype, accumulates in f32).
    p4 = predict.astype(jnp.bfloat16)
    t4 = target.astype(jnp.bfloat16)
    out4 = jax.block_until_ready(binary_dice_loss(p4, t4, force_pallas=True))
    ref4 = _reference(p4.astype(jnp.float32), t4.astype(jnp.float32))
    assert jnp.allclose(out4, ref4, atol=1e-4, rtol=1e-4), (out4, ref4)

    print("KERNEL_OK")
</pallas_src>

<mosaic_0001>
module attributes {stable_mosaic.version = 11 : i64} {
  func.func @_dice_kernel(%arg0: i32, %arg1: i32, %arg2: i32, %arg3: memref<1x8x128xf32, #tpu.memory_space<vmem>>, %arg4: memref<1x8x128xf32, #tpu.memory_space<vmem>>, %arg5: memref<1x1x8x128xf32, #tpu.memory_space<vmem>>, %arg6: memref<1x1x8x128xf32, #tpu.memory_space<vmem>>) attributes {dimension_semantics = [#tpu.dimension_semantics<parallel>, #tpu.dimension_semantics<parallel>, #tpu.dimension_semantics<arbitrary>], iteration_bounds = array<i64: 1, 2, 1>, scalar_prefetch = 0 : i64, scratch_operands = 0 : i64, tpu.core_type = #tpu.core_type<tc>, window_params = [{transform_indices = @transform_0, window_bounds = array<i64: 1, 8, 128>}, {transform_indices = @transform_1, window_bounds = array<i64: 1, 8, 128>}, {transform_indices = @transform_2, window_bounds = array<i64: 1, 1, 8, 128>}, {transform_indices = @transform_3, window_bounds = array<i64: 1, 1, 8, 128>}]} {
    %c0_i32 = arith.constant 0 : i32
    %0 = arith.cmpi eq, %arg2, %c0_i32 : i32
    %1 = arith.extui %0 : i1 to i32
    %c0_i32_0 = arith.constant 0 : i32
    %2 = arith.cmpi ne, %1, %c0_i32_0 : i32
    scf.if %2 {
      %cst = arith.constant 0.000000e+00 : f32
      %23 = vector.broadcast %cst : f32 to vector<1x1x8x128xf32>
      %c0_22 = arith.constant 0 : index
      %c0_23 = arith.constant 0 : index
      %c0_24 = arith.constant 0 : index
      %c0_25 = arith.constant 0 : index
      %24 = vector.load %arg5[%c0_22, %c0_23, %c0_24, %c0_25] : memref<1x1x8x128xf32, #tpu.memory_space<vmem>>, vector<1x1x8x128xf32>
      tpu.vector_store %arg5[%c0_22, %c0_23, %c0_24, %c0_25], %23 {strides = array<i32>} : memref<1x1x8x128xf32, #tpu.memory_space<vmem>>, vector<1x1x8x128xf32>,
      %cst_26 = arith.constant 0.000000e+00 : f32
      %25 = vector.broadcast %cst_26 : f32 to vector<1x1x8x128xf32>
      %c0_27 = arith.constant 0 : index
      %c0_28 = arith.constant 0 : index
      %c0_29 = arith.constant 0 : index
      %c0_30 = arith.constant 0 : index
      %26 = vector.load %arg6[%c0_27, %c0_28, %c0_29, %c0_30] : memref<1x1x8x128xf32, #tpu.memory_space<vmem>>, vector<1x1x8x128xf32>
      tpu.vector_store %arg6[%c0_27, %c0_28, %c0_29, %c0_30], %25 {strides = array<i32>} : memref<1x1x8x128xf32, #tpu.memory_space<vmem>>, vector<1x1x8x128xf32>,
    } else {
    }
    %c0 = arith.constant 0 : index
    %c0_1 = arith.constant 0 : index
    %c0_2 = arith.constant 0 : index
    %3 = vector.load %arg3[%c0, %c0_1, %c0_2] : memref<1x8x128xf32, #tpu.memory_space<vmem>>, vector<1x8x128xf32>
    %4 = vector.shape_cast %3 : vector<1x8x128xf32> to vector<8x128xf32>
    %c0_3 = arith.constant 0 : index
    %c0_4 = arith.constant 0 : index
    %c0_5 = arith.constant 0 : index
    %5 = vector.load %arg4[%c0_3, %c0_4, %c0_5] : memref<1x8x128xf32, #tpu.memory_space<vmem>>, vector<1x8x128xf32>
    %6 = vector.shape_cast %5 : vector<1x8x128xf32> to vector<8x128xf32>
    %7 = arith.mulf %4, %6 : vector<8x128xf32>
    %8 = arith.mulf %4, %4 : vector<8x128xf32>
    %9 = arith.mulf %6, %6 : vector<8x128xf32>
    %10 = arith.addf %8, %9 : vector<8x128xf32>
    %c0_6 = arith.constant 0 : index
    %c0_7 = arith.constant 0 : index
    %c0_8 = arith.constant 0 : index
    %c0_9 = arith.constant 0 : index
    %11 = vector.load %arg5[%c0_6, %c0_7, %c0_8, %c0_9] : memref<1x1x8x128xf32, #tpu.memory_space<vmem>>, vector<1x1x8x128xf32>
    %12 = vector.shape_cast %11 : vector<1x1x8x128xf32> to vector<8x128xf32>
    %13 = arith.addf %12, %7 : vector<8x128xf32>
    %c0_10 = arith.constant 0 : index
    %c0_11 = arith.constant 0 : index
    %c0_12 = arith.constant 0 : index
    %c0_13 = arith.constant 0 : index
    %14 = vector.load %arg5[%c0_10, %c0_11, %c0_12, %c0_13] : memref<1x1x8x128xf32, #tpu.memory_space<vmem>>, vector<1x1x8x128xf32>
    %15 = vector.shape_cast %14 : vector<1x1x8x128xf32> to vector<8x128xf32>
    %16 = vector.shape_cast %13 : vector<8x128xf32> to vector<1x1x8x128xf32>
    tpu.vector_store %arg5[%c0_10, %c0_11, %c0_12, %c0_13], %16 {strides = array<i32>} : memref<1x1x8x128xf32, #tpu.memory_space<vmem>>, vector<1x1x8x128xf32>,
    %c0_14 = arith.constant 0 : index
    %c0_15 = arith.constant 0 : index
    %c0_16 = arith.constant 0 : index
    %c0_17 = arith.constant 0 : index
    %17 = vector.load %arg6[%c0_14, %c0_15, %c0_16, %c0_17] : memref<1x1x8x128xf32, #tpu.memory_space<vmem>>, vector<1x1x8x128xf32>
    %18 = vector.shape_cast %17 : vector<1x1x8x128xf32> to vector<8x128xf32>
    %19 = arith.addf %18, %10 : vector<8x128xf32>
    %c0_18 = arith.constant 0 : index
    %c0_19 = arith.constant 0 : index
    %c0_20 = arith.constant 0 : index
    %c0_21 = arith.constant 0 : index
    %20 = vector.load %arg6[%c0_18, %c0_19, %c0_20, %c0_21] : memref<1x1x8x128xf32, #tpu.memory_space<vmem>>, vector<1x1x8x128xf32>
    %21 = vector.shape_cast %20 : vector<1x1x8x128xf32> to vector<8x128xf32>
    %22 = vector.shape_cast %19 : vector<8x128xf32> to vector<1x1x8x128xf32>
    tpu.vector_store %arg6[%c0_18, %c0_19, %c0_20, %c0_21], %22 {strides = array<i32>} : memref<1x1x8x128xf32, #tpu.memory_space<vmem>>, vector<1x1x8x128xf32>,
    return
  }
  func.func @transform_0(%arg0: i32, %arg1: i32, %arg2: i32) -> (i32, i32, i32) {
    %c1_i32 = arith.constant 1 : i32
    %0 = arith.muli %arg0, %c1_i32 : i32
    %1 = arith.addi %0, %arg2 : i32
    %c0_i32 = arith.constant 0 : i32
    %c0_i32_0 = arith.constant 0 : i32
    return %arg1, %1, %c0_i32 : i32, i32, i32
  }
  func.func @transform_1(%arg0: i32, %arg1: i32, %arg2: i32) -> (i32, i32, i32) {
    %c1_i32 = arith.constant 1 : i32
    %0 = arith.muli %arg0, %c1_i32 : i32
    %1 = arith.addi %0, %arg2 : i32
    %c0_i32 = arith.constant 0 : i32
    %c0_i32_0 = arith.constant 0 : i32
    return %arg1, %1, %c0_i32 : i32, i32, i32
  }
  func.func @transform_2(%arg0: i32, %arg1: i32, %arg2: i32) -> (i32, i32, i32, i32) {
    %c0_i32 = arith.constant 0 : i32
    %c0_i32_0 = arith.constant 0 : i32
    %c0_i32_1 = arith.constant 0 : i32
    return %arg0, %arg1, %c0_i32, %c0_i32_0 : i32, i32, i32, i32
  }
  func.func @transform_3(%arg0: i32, %arg1: i32, %arg2: i32) -> (i32, i32, i32, i32) {
    %c0_i32 = arith.constant 0 : i32
    %c0_i32_0 = arith.constant 0 : i32
    %c0_i32_1 = arith.constant 0 : i32
    return %arg0, %arg1, %c0_i32, %c0_i32_0 : i32, i32, i32, i32
  }
}

</mosaic_0001>

<bundles_post_ra>
// kernel: tpu_custom_call.1
= control target key start
LH: loop header
LB: loop body
LE: loop exit
PB: predicated region body
PF: predicated region fallthrough
CT: control target
= control target key end

     0   :  { %9 = vsyncpa [#allocation3], 0  ;;  %s1024_s0 = inlined_call_operand.hbm [shape: f32[2,8,128], index: 0, kind: input, shape index: {}]   ;;  %s1025_s1 = inlined_call_operand.hbm [shape: f32[2,8,128], index: 1, kind: input, shape index: {}]   ;;  %s1026_s2 = inlined_call_operand.hbm [shape: f32[1,2,8,128], index: 2, kind: output, shape index: {0}]   ;;  %s1027_s3 = inlined_call_operand.hbm [shape: f32[1,2,8,128], index: 3, kind: output, shape index: {1}]  }
   0x1   :  { %11 = vsyncpa [#allocation3 + $0x1], 0 }
   0x2   :  { %12 = vsyncpa [#allocation6], 0 }
   0x3   :  { %14 = vsyncpa [#allocation6 + $0x1], 0 }
   0x4   :  { %15 = vsyncpa [#allocation4], 0 }
   0x5   :  { %17 = vsyncpa [#allocation4 + $0x1], 0 }
   0x6   :  { %18 = vsyncpa [#allocation9], 0 }
   0x7   :  { %20 = vsyncpa [#allocation9 + $0x1], 0  ;;  %s765_s12 = smov 0   ;;  %s767_s13 = smov 0  }
   0x8   :  { %s769_s14 = smov 0   ;;  %s771_s15 = smov 0  }
   0x9   :  { %s773_s16 = smov 0   ;;  %s775_s17 = smov 0  }
   0xa LB: > { %s469_s18 = sadd.s32 4294967295, %s739_s17   ;;  %s470_s19 = sadd.s32 4294967294, %s739_s17   ;;  %s739_s17 = sphi %s775_s17, %s26_s17   ;;  %s735_s16 = sphi %s773_s16, %s1047_s16   ;;  %s731_s15 = sphi %s771_s15, %s1046_s15   ;;  %s727_s14 = sphi %s769_s14, %s1045_s14   ;;  %s723_s13 = sphi %s767_s13, %s1044_s13   ;;  %s719_s12 = sphi %s765_s12, %s1043_s12  }
   0xb   : > { %s41_s20 = sadd.s32 1, %s735_s16  ;;  %s56_s21 = sadd.s32 1, %s727_s14 }
   0xc   : > { %p43_p0 = scmp.ge.s32.totalorder %s41_s20, 2  ;;  %p63_p1 = scmp.ne.s32.totalorder %s727_s14, %s723_s13 }
   0xd   : > { %p64_p2 = scmp.eq.s32.totalorder %s739_s17, 0  ;;  %p69_p3 = scmp.ne.s32.totalorder %s723_s13, %s719_s12 }
   0xe   : > { %s1049_s20 = smov (%p43_p0, %s41_s20), 0  ;;  %p70_p5 = scmp.eq.s32.totalorder %s469_s18, 0 }
   0xf   : > { %p806_p4 = por %p64_p2, %p63_p1  ;;  %s51_s23 = ssub.s32 %s735_s16, %s1049_s20 }
  0x10   : > { %p125_p6 = scmp.eq.s32.totalorder %s469_s18, 1  ;;  %p54_p7 = scmp.eq.s32.totalorder %s51_s23, 0 }
  0x11   : > { %p812_p8 = por %p70_p5, %p69_p3  ;;  %p131_p10 = scmp.eq.s32.totalorder %s470_s19, 1 }
  0x12   : > { %p816_p9 = por %p125_p6, %p63_p1  ;;  %p510_p13 = scmp.lt.s32.totalorder %s739_s17, 2 }
  0x13   : > { %s1031_s24 = scalar_select %p812_p8, 1, 0 }
  0x14   : > { %s1032_s25 = scalar_select %p816_p9, 1, 0 }
  0x15   : > { %s821_s26 = scalar_select %p54_p7, %s727_s14, %s56_s21  }
  0x16   : > { %p823_p11 = por %p131_p10, %p69_p3  ;;  %s830_s28 = sand.u32 1, %s727_s14  }
  0x17   : > { %s473_s29 = sshll.u32 %s830_s28, 3  ;;  %s474_s30 = sshll.u32 %s735_s16, 7 }
  0x18   : > { %s1033_s27 = scalar_select %p823_p11, 1, 0 }
  0x19   : > { %s839_s6 = scalar_lea.hbm %s1024_s0, %s474_s30  ;;  %s183_s7 = scalar_lea.vmem [#allocation2], %s473_s29 }
  0x1a   : > { %s192_s8 = sshll.u32 %s183_s7, 4  ;;  %p847_p0 = pnand %p510_p13, %p806_p4  ;;  %s843_s8 = int_to_ptr.vmem [resolvable:$true] %s192_s8 }
  0x1b   : > { %s180_s10 = scalar_lea.sflag [#allocation3], %s830_s28  ;;  %s561_s11 = scalar_lea.hbm %s839_s6, 128 }
  0x1c   : > { %p562_p3 = scmp.ne.s32.totalorder %s839_s6, %s561_s11  ;;  %p563_p5 = pneg %p847_p0 }
  0x1d   : > { %s566_s21 = scalar_lea.hbm %s1024_s0, 256  ;;  %p567_p4 = scmp.lt.u32.totalorder %s839_s6, %s1024_s0 }
  0x1e   : > { %p564_p6 = pnand %p563_p5, %p562_p3  ;;  %p568_p10 = scmp.lt.u32.totalorder %s566_s21, %s561_s11 }
  0x1f   : > { %p570_p12 = scmp.lt.u32.totalorder %s561_s11, %s839_s6 }
  0x20   : > { %p565_p7 = pneg %p564_p6  ;;  %p569_p13 = por %p568_p10, %p567_p4 }
  0x22   : > { %p571_p1 = por %p570_p12, %p569_p13 }
  0x24   : > { %p572_p2 = pnand %p571_p1, %p565_p7 }
  0x26   : > { %575 = shalt.err (!%p572_p2)
}
  0x27   : > { %s576_s4 = scalar_lea.vmem %s843_s8, 128  ;;  %s741_s5 = smov [#allocation2]  }
  0x28   : > { %p577_p3 = scmp.ne.s32.totalorder %s843_s8, %s576_s4  ;;  %s581_s7 = sshll.u32 %s741_s5, 4  ;;  %s582_s7 = int_to_ptr.vmem [resolvable:$false] %s581_s7 }
  0x29   : > { %s583_s18 = scalar_lea.vmem %s582_s7, 256  ;;  %p584_p9 = scmp.lt.s32.totalorder %s843_s8, %s582_s7 }
  0x2a   : > { %p579_p6 = pnand %p577_p3, %p563_p5  ;;  %p585_p4 = scmp.lt.s32.totalorder %s583_s18, %s576_s4 }
  0x2c   : > { %p580_p11 = pneg %p579_p6  ;;  %p586_p10 = por %p585_p4, %p584_p9 }
  0x2e   : > { %p587_p12 = pnand %p586_p10, %p580_p11 }
  0x30   : > { %590 = shalt.err (!%p587_p12)
}
  0x31   : > { %499 = dma.hbm_to_vmem [thread:$0]  (!%p847_p0), %s839_s6, 128, %s843_s8, %s180_s10  }
  0x32   : > { %p1035_p1 = scmp.lt.s32.totalorder %s739_s17, 3  ;;  %p1036_p2 = scmp.ge.s32.totalorder %s739_s17, 1 }
  0x33   : > { %s892_s22 = scalar_lea.hbm %s1025_s1, %s474_s30  ;;  %s203_s23 = scalar_lea.vmem [#allocation5], %s473_s29 }
  0x34   : > { %p883_p7 = pnand %p1036_p2, %p1035_p1  ;;  %s212_s4 = sshll.u32 %s203_s23, 4  ;;  %s213_s4 = int_to_ptr.vmem [resolvable:$true] %s212_s4 }
  0x35   : > { %s200_s6 = scalar_lea.sflag [#allocation6], %s830_s28  ;;  %s591_s8 = scalar_lea.hbm %s892_s22, 128 }
  0x36   : > { %s1037_s11 = scalar_select %p883_p7, 1, 0 }
  0x37   : > { %p592_p9 = scmp.ne.s32.totalorder %s892_s22, %s591_s8  ;;  %s596_s30 = scalar_lea.hbm %s1025_s1, 256 }
  0x38   : > { %p597_p3 = scmp.lt.u32.totalorder %s892_s22, %s1025_s1  ;;  %p598_p6 = scmp.lt.u32.totalorder %s596_s30, %s591_s8 }
  0x39   : > { %p594_p11 = pnand %p592_p9, %p563_p5  ;;  %p600_p10 = scmp.lt.u32.totalorder %s591_s8, %s892_s22 }
  0x3a   : > { %p599_p4 = por %p598_p6, %p597_p3 }
  0x3b   : > { %p595_p13 = pneg %p594_p11 }
  0x3c   : > { %p601_p12 = por %p600_p10, %p599_p4 }
  0x3e   : > { %p602_p1 = pnand %p601_p12, %p595_p13 }
  0x40   : > { %605 = shalt.err (!%p602_p1)
}
  0x41   : > { %s606_s28 = scalar_lea.vmem %s213_s4, 128  ;;  %s742_s29 = smov [#allocation5]  }
  0x42   : > { %p607_p2 = scmp.ne.s32.totalorder %s213_s4, %s606_s28  ;;  %s611_s19 = sshll.u32 %s742_s29, 4  ;;  %s612_s19 = int_to_ptr.vmem [resolvable:$false] %s611_s19 }
  0x43   : > { %s613_s21 = scalar_lea.vmem %s612_s19, 256  ;;  %p614_p8 = scmp.lt.s32.totalorder %s213_s4, %s612_s19 }
  0x44   : > { %p609_p9 = pnand %p607_p2, %p563_p5  ;;  %p615_p7 = scmp.lt.s32.totalorder %s613_s21, %s606_s28 }
  0x46   : > { %p610_p11 = pneg %p609_p9  ;;  %p616_p3 = por %p615_p7, %p614_p8 }
  0x48   : > { %p617_p6 = pnand %p616_p3, %p610_p11 }
  0x4a   : > { %620 = shalt.err (!%p617_p6)
}
  0x4b   : > { %502 = dma.hbm_to_vmem [thread:$0]  (!%p847_p0), %s892_s22, 128, %s213_s4, %s200_s6  }
  0x4c   : > { %p1038_p13 = scmp.ne.s32.totalorder %s1037_s11, 0 }
  0x4d   : > { %s919_s23 = sand.u32 (!%p1038_p13), 1, %s723_s13   ;;  %p1039_p8 = scmp.ne.s32.totalorder (!%p1038_p13), %s1031_s24, 0 }
  0x4e   : > { %221 = sbr.rel (%p1038_p13) target bundleno = 138 (0x8a), region = 28  ;;  %s922_s8 = sshll.u32 (!%p1038_p13), %s919_s23, 3 }
  0x4f   : > { %s224_s10 = scalar_lea.sflag (!%p1038_p13), [#allocation3], %s919_s23  ;;  %s227_s5 = scalar_lea.vmem (!%p1038_p13), [#allocation2], %s922_s8 }
  0x55   : > { %702 = dma.done.wait (%p1039_p8), %s224_s10, 128  }
  0x56   : > { %704 = vsyncadd (%p1039_p8), %s224_s10, 4294967168  ;;  %s233_s9 = scalar_lea.sflag [#allocation6], %s919_s23  ;;  %s236_s11 = scalar_lea.vmem [#allocation5], %s922_s8 }
  0x57   : > { %706 = dma.done.wait (%p1039_p8), %s233_s9, 128  }
  0x58   : > { %708 = vsyncadd (%p1039_p8), %s233_s9, 4294967168  ;;  %v277_v0 = vld [vmem:[%s227_s5] sm:$0xff]  ;;  %v278_v1 = vld [vmem:[%s236_s11] sm:$0xff]  ;;  %s484_s22 = sshll.u32 %s731_s15, 7  ;;  %s261_s4 = scalar_lea.vmem [#allocation7], %s922_s8 }
  0x59   : > { %s310_s6 = sshll.u32 %s261_s4, 4  ;;  %v279_v2 = vmul.f32 %v278_v1, %v277_v0  ;;  %v280_v3 = vmul.f32 %v277_v0, %v277_v0  ;;  %v281_v4 = vmul.f32 %v278_v1, %v278_v1  ;;  %s268_s30 = scalar_lea.vmem [#allocation8], %s922_s8  ;;  %s946_s6 = int_to_ptr.vmem [resolvable:$true] %s310_s6 }
  0x5a   : > { %s325_s7 = sshll.u32 %s268_s30, 4  ;;  %s944_s28 = scalar_lea.hbm %s1026_s2, %s484_s22  ;;  %s953_s7 = int_to_ptr.vmem [resolvable:$true] %s325_s7 }
  0x5b   : > { %v282_v5 = vadd.f32 %v281_v4, %v280_v3  ;;  %285 = vst [vmem:[%s261_s4] sm:$0xff] %v279_v2  ;;  %s951_s19 = scalar_lea.hbm %s1027_s3, %s484_s22  ;;  %s290_s21 = scalar_lea.sflag [#allocation4], %s919_s23 }
  0x5c   : > { %s621_s10 = scalar_lea.vmem %s946_s6, 128  ;;  %p1040_p5 = scmp.ne.s32.totalorder %s1032_s25, 0 }
  0x5d   : > { %p622_p0 = scmp.ne.s32.totalorder %s946_s6, %s621_s10  ;;  %s743_s5 = smov [#allocation7]  }
  0x5e   : > { %s625_s9 = sshll.u32 %s743_s5, 4  ;;  %s626_s9 = int_to_ptr.vmem [resolvable:$false] %s625_s9 }
  0x5f   : > { %p623_p7 = pnand %p622_p0, %p1040_p5  ;;  %s627_s11 = scalar_lea.vmem %s626_s9, 256 }
  0x60   : > { %p628_p10 = scmp.lt.s32.totalorder %s946_s6, %s626_s9  ;;  %p629_p12 = scmp.lt.s32.totalorder %s627_s11, %s621_s10 }
  0x61   : > { %p624_p4 = pneg %p623_p7 }
  0x62   : > { %p630_p1 = por %p629_p12, %p628_p10 }
  0x64   : > { %p631_p2 = pnand %p630_p1, %p624_p4 }
  0x66   : > { %634 = shalt.err (!%p631_p2)
}
  0x67   : > { %s635_s22 = scalar_lea.hbm %s944_s28, 128  ;;  %s639_s18 = scalar_lea.hbm %s1026_s2, 256 }
  0x68   : > { %p636_p9 = scmp.ne.s32.totalorder %s944_s28, %s635_s22  ;;  %p640_p6 = scmp.lt.u32.totalorder %s944_s28, %s1026_s2 }
  0x69   : > { %p641_p13 = scmp.lt.u32.totalorder %s639_s18, %s635_s22  ;;  %p643_p0 = scmp.lt.u32.totalorder %s635_s22, %s944_s28 }
  0x6a   : > { %p637_p11 = pnand %p636_p9, %p1040_p5 }
  0x6b   : > { %p642_p8 = por %p641_p13, %p640_p6 }
  0x6c   : > { %p638_p3 = pneg %p637_p11 }
  0x6d   : > { %p644_p7 = por %p643_p0, %p642_p8 }
  0x6f   : > { %p645_p4 = pnand %p644_p7, %p638_p3 }
  0x71   : > { %648 = shalt.err (!%p645_p4)
}
  0x72   : > { %492 = dma.vmem_to_hbm [thread:$0]  (%p1040_p5), %s946_s6, 128, %s944_s28, %s290_s21   ;;  %288 = vst [vmem:[%s268_s30] sm:$0xff] %v282_v5 }
  0x73   : > { %s295_s10 = scalar_lea.sflag [#allocation9], %s919_s23  ;;  %s649_s5 = scalar_lea.vmem %s953_s7, 128 }
  0x74   : > { %p650_p10 = scmp.ne.s32.totalorder %s953_s7, %s649_s5  ;;  %s744_s9 = smov [#allocation8]  }
  0x75   : > { %s653_s11 = sshll.u32 %s744_s9, 4  ;;  %s654_s11 = int_to_ptr.vmem [resolvable:$false] %s653_s11 }
  0x76   : > { %p651_p12 = pnand %p650_p10, %p1040_p5  ;;  %s655_s22 = scalar_lea.vmem %s654_s11, 256 }
  0x77   : > { %p656_p2 = scmp.lt.s32.totalorder %s953_s7, %s654_s11  ;;  %p657_p9 = scmp.lt.s32.totalorder %s655_s22, %s649_s5 }
  0x78   : > { %p652_p1 = pneg %p651_p12 }
  0x79   : > { %p658_p11 = por %p657_p9, %p656_p2 }
  0x7b   : > { %p659_p3 = pnand %p658_p11, %p652_p1 }
  0x7d   : > { %662 = shalt.err (!%p659_p3)
}
  0x7e   : > { %s663_s23 = scalar_lea.hbm %s951_s19, 128  ;;  %s667_s30 = scalar_lea.hbm %s1027_s3, 256 }
  0x7f   : > { %p664_p6 = scmp.ne.s32.totalorder %s951_s19, %s663_s23  ;;  %p668_p0 = scmp.lt.u32.totalorder %s951_s19, %s1027_s3 }
  0x80   : > { %p669_p7 = scmp.lt.u32.totalorder %s667_s30, %s663_s23  ;;  %p671_p10 = scmp.lt.u32.totalorder %s663_s23, %s951_s19 }
  0x81   : > { %p665_p13 = pnand %p664_p6, %p1040_p5 }
  0x82   : > { %p670_p4 = por %p669_p7, %p668_p0 }
  0x83   : > { %p666_p8 = pneg %p665_p13 }
  0x84   : > { %p672_p12 = por %p671_p10, %p670_p4 }
  0x86   : > { %p673_p1 = pnand %p672_p12, %p666_p8 }
  0x88   : > { %676 = shalt.err (!%p673_p1)
}
  0x89   : > { %493 = dma.vmem_to_hbm [thread:$0]  (%p1040_p5), %s953_s7, 128, %s951_s19, %s295_s10  }
  0x8a PF: > { %s337_s4 = sand.u32 1, %s719_s12   ;;  %p1041_p2 = scmp.ne.s32.totalorder %s1033_s27, 0 }
  0x8b   : > { %p1042_p9 = scmp.ge.s32.totalorder %s739_s17, 2  ;;  %s338_s24 = scalar_lea.sflag [#allocation4], %s337_s4 }
  0x8d   : > { %p504_p11 = pnand %p1042_p9, %p1041_p2 }
  0x8f   : > { %710 = dma.done.wait (!%p504_p11), %s338_s24, 128  }
  0x90   : > { %712 = vsyncadd (!%p504_p11), %s338_s24, 4294967168  ;;  %s347_s18 = scalar_lea.sflag [#allocation9], %s337_s4 }
  0x91   : > { %714 = dma.done.wait (!%p504_p11), %s347_s18, 128  }
  0x92   : > { %716 = vsyncadd (!%p504_p11), %s347_s18, 4294967168  ;;  %s26_s17 = sadd.s32 1, %s739_s17   ;;  %s1043_s12 = smov %s723_s13 }
  0x93   : > { %p23_p3 = scmp.ge.s32.totalorder %s26_s17, 4   ;;  %s1044_s13 = smov %s727_s14 }
  0x94   : > { %s1045_s14 = smov %s821_s26  ;;  %s1046_s15 = smov %s735_s16 }
  0x95   : > { %s1047_s16 = smov %s1049_s20  ;;  %25 = sbr.rel (!%p23_p3) target bundleno = 10 (0xa), region = 107 }
  0x9c   :  { %352 = vsyncpa [#allocation3], 1 }
  0x9d   :  { %354 = vsyncpa [#allocation3 + $0x1], 1 }
  0x9e   :  { %355 = vsyncpa [#allocation6], 1 }
  0x9f   :  { %357 = vsyncpa [#allocation6 + $0x1], 1 }
  0xa0   :  { %358 = vsyncpa [#allocation4], 1 }
  0xa1   :  { %360 = vsyncpa [#allocation4 + $0x1], 1 }
  0xa2   :  { %361 = vsyncpa [#allocation9], 1 }
  0xa3   :  { %363 = vsyncpa [#allocation9 + $0x1], 1 }

</bundles_post_ra>
